<compile_context>
chip_gen: v7x
topology: tpu7x:2x2x1
jax: 0.10.0
libtpu: 0.0.40
codegen_flags: <defaults>
</compile_context>

<pallas_src>
import jax
import jax.numpy as jnp
from jax.experimental import pallas as pl
from jax.experimental.pallas import tpu as pltpu


# ------------------------------ tiling helpers ------------------------------

def _pick_batch_tile(B, S, H, itemsize, budget_bytes=8 << 20):
    """Largest batch tile that divides B, is a multiple of 8 (sublane rule), keeps the
    double-buffered encoder block within budget, and leaves >=2 grid steps when B allows."""
    if B <= 8 or B % 8 != 0:
        return B                       # full-extent block: always a legal BlockSpec
    tb = 8
    while (B % (2 * tb) == 0 and 2 * tb < B
           and 2 * S * (2 * tb) * H * itemsize <= budget_bytes):
        tb *= 2
    return tb


# ----------------------------- Pallas kernel ------------------------------

def _make_attn_kernel(tb: int):
    def attn_kernel(hid_ref, enc_ref, w_ref, out_ref):
        """One batch tile of fused Luong 'general' attention.

        hid_ref : (tb, H)      decoder hidden rows for this tile
        enc_ref : (S, tb, H)   encoder outputs, native (S, B, H) HBM layout
        w_ref   : (H, H)       attn.weight, PyTorch (out_features, in_features) layout
        out_ref : (tb, S)      softmax attention weights
        """
        # hw[b, h] = sum_o hid[b, o] * W[o, h]  -- exact reassociation of hidden . (W e);
        # one (tb, H) x (H, H) MXU matmul with f32 accumulation.
        hw = jnp.dot(hid_ref[...], w_ref[...], preferred_element_type=jnp.float32)
        hw = hw.astype(enc_ref.dtype)          # keep both MXU operands in the same dtype

        # Per-batch-row contraction over H on the MXU (static unroll; tb is small):
        #   scores[b, s] = hw[b, :] . enc[s, b, :]
        rows = []
        for b in range(tb):
            e_b = enc_ref[:, b, :]                                   # (S, H)
            rows.append(jax.lax.dot_general(
                hw[b:b + 1, :], e_b,
                dimension_numbers=(((1,), (1,)), ((), ())),          # contract over H
                preferred_element_type=jnp.float32))                 # (1, S) f32
        scores = jnp.concatenate(rows, axis=0)                       # (tb, S), S on lanes

        # Numerically-stable softmax over S (lane axis), all f32.  The hidden . bias
        # term is constant over S per row and cancels here, so bias was dropped.
        m = jnp.max(scores, axis=-1, keepdims=True)
        p = jnp.exp(scores - m)
        denom = jnp.sum(p, axis=-1, keepdims=True)
        out_ref[...] = (p * pl.reciprocal(denom, approx=False)).astype(out_ref.dtype)

    return attn_kernel


# ------------------------------- wrapper -----------------------------------

@jax.jit
def attn_forward(hidden, encoder_outputs, w, b=None):
    """Mirrors Attn.forward.

    hidden:          (1, B, H)  decoder hidden state
    encoder_outputs: (S, B, H)  native layout (NOT transposed outside the kernel)
    w:               (H, H)     attn.weight (torch (out, in) layout)
    b:               (1, H)     attn.bias -- accepted but unused: it cancels exactly
                                 in the softmax (constant over S per batch row).
    returns:         (B, 1, S)  attention weights, float32
    """
    del b                                            # exact no-op under softmax
    S, B, H = encoder_outputs.shape
    hid = hidden[0].astype(encoder_outputs.dtype)    # (B, H)
    w = w.astype(encoder_outputs.dtype)

    itemsize = jnp.dtype(encoder_outputs.dtype).itemsize
    tb = _pick_batch_tile(B, S, H, itemsize)
    grid = (B // tb,)

    # Double-buffered enc/hid/out tiles + resident weight, with headroom, capped
    # below v7x's 64 MiB physical VMEM.
    tile_bytes = (S * tb * H + tb * H + H * H) * itemsize + tb * S * 4
    vmem_limit = int(min(max(4 * tile_bytes + (1 << 20), 16 << 20), 48 << 20))

    out = pl.pallas_call(
        _make_attn_kernel(tb),
        grid=grid,
        in_specs=[
            pl.BlockSpec((tb, H), lambda i: (i, 0)),        # hidden rows of this tile
            pl.BlockSpec((S, tb, H), lambda i: (0, i, 0)),  # encoder block, native layout
            pl.BlockSpec((H, H), lambda i: (0, 0)),         # weight, VMEM resident
        ],
        out_specs=pl.BlockSpec((tb, S), lambda i: (i, 0)),  # S on lanes
        out_shape=jax.ShapeDtypeStruct((B, S), jnp.float32),
        compiler_params=pltpu.CompilerParams(
            dimension_semantics=("parallel",),              # megacore sharding on v7x
            vmem_limit_bytes=vmem_limit),
    )(hid, encoder_outputs, w)
    # TODO(synk): for tiny S the (tb, S) store is lane-masked; at realistic S (>=128)
    # it is already dense, so no output padding is added here.
    return out[:, None, :]                                  # .unsqueeze(1) -> (B, 1, S)


# --------------------------- pure-JAX reference -----------------------------

def attn_ref(hidden, encoder_outputs, w, b):
    """Literal transcription of the PyTorch module (general_score + forward), f32."""
    h = hidden.astype(jnp.float32)
    e = encoder_outputs.astype(jnp.float32)
    wf = w.astype(jnp.float32)
    bf = b.astype(jnp.float32)
    energy = jnp.einsum('sbh,oh->sbo', e, wf) + bf                 # Linear: x @ W^T + b
    attn_energies = jnp.sum(h * energy, axis=2).T                  # (B, S)
    return jax.nn.softmax(attn_energies, axis=1)[:, None, :]       # (B, 1, S)


# --------------------------------- main -------------------------------------

if __name__ == "__main__":
    B, S, H = 16, 8, 128   # batch, source seq length, hidden size (small, lane-aligned)
    key = jax.random.PRNGKey(0)
    k1, k2, k3, k4 = jax.random.split(key, 4)

    hidden = jax.random.normal(k1, (1, B, H), dtype=jnp.float32)
    encoder_outputs = jax.random.normal(k2, (S, B, H), dtype=jnp.float32)
    w = 0.02 * jax.random.normal(k3, (H, H), dtype=jnp.float32)    # torch (out, in) layout
    b = 0.10 * jax.random.normal(k4, (1, H), dtype=jnp.float32)

    ref = attn_ref(hidden, encoder_outputs, w, b)

    # float32 inputs: tight check against the reference
    out32 = jax.block_until_ready(attn_forward(hidden, encoder_outputs, w, b))
    assert out32.shape == (B, 1, S) and out32.dtype == jnp.float32
    assert bool(jnp.allclose(jnp.sum(out32, axis=-1), 1.0, atol=1e-5))
    assert bool(jnp.allclose(out32, ref, rtol=1e-3, atol=1e-5))

    # bfloat16 inputs ("producer emits bf16"): halves the HBM stream; f32 accumulation
    out16 = jax.block_until_ready(attn_forward(
        hidden.astype(jnp.bfloat16), encoder_outputs.astype(jnp.bfloat16),
        w.astype(jnp.bfloat16), b))
    assert out16.shape == (B, 1, S) and out16.dtype == jnp.float32
    assert bool(jnp.allclose(jnp.sum(out16, axis=-1), 1.0, atol=1e-4))
    assert bool(jnp.allclose(out16, ref, rtol=8e-2, atol=8e-3))

    print("KERNEL_OK")
</pallas_src>

<mosaic_0001>
module attributes {stable_mosaic.version = 11 : i64} {
  func.func @attn_kernel(%arg0: i32, %arg1: memref<8x128xf32, #tpu.memory_space<vmem>>, %arg2: memref<8x8x128xf32, #tpu.memory_space<vmem>>, %arg3: memref<128x128xf32, #tpu.memory_space<vmem>>, %arg4: memref<8x8xf32, #tpu.memory_space<vmem>>) attributes {dimension_semantics = [#tpu.dimension_semantics<parallel>], iteration_bounds = array<i64: 2>, scalar_prefetch = 0 : i64, scratch_operands = 0 : i64, tpu.core_type = #tpu.core_type<tc>, window_params = [{transform_indices = @transform_0, window_bounds = array<i64: 8, 128>}, {transform_indices = @transform_1, window_bounds = array<i64: 8, 8, 128>}, {pipeline_mode = #tpu.pipeline_mode<synchronous>, transform_indices = @transform_2, window_bounds = array<i64: 128, 128>}, {transform_indices = @transform_3, window_bounds = array<i64: 8, 8>}]} {
    %c0 = arith.constant 0 : index
    %c0_0 = arith.constant 0 : index
    %0 = vector.load %arg1[%c0, %c0_0] : memref<8x128xf32, #tpu.memory_space<vmem>>, vector<8x128xf32>
    %c0_1 = arith.constant 0 : index
    %c0_2 = arith.constant 0 : index
    %1 = vector.load %arg3[%c0_1, %c0_2] : memref<128x128xf32, #tpu.memory_space<vmem>>, vector<128x128xf32>
    %cst = arith.constant dense<0.000000e+00> : vector<8x128xf32>
    %2 = tpu.matmul %0, %1, %cst {dimension_numbers = #tpu.dot_dimension_numbers<[1], [0], [0], [1], [0, 0, 1, 1], [], []>} : vector<8x128xf32>, vector<128x128xf32>, vector<8x128xf32> -> vector<8x128xf32>
    %c0_3 = arith.constant 0 : index
    %c0_4 = arith.constant 0 : index
    %c0_5 = arith.constant 0 : index
    %3 = vector.load %arg2[%c0_3, %c0_4, %c0_5] : memref<8x8x128xf32, #tpu.memory_space<vmem>>, vector<8x1x128xf32>
    %4 = vector.shape_cast %3 : vector<8x1x128xf32> to vector<8x128xf32>
    %5 = vector.extract_strided_slice %2 {offsets = [0, 0], sizes = [1, 128], strides = [1, 1]} : vector<8x128xf32> to vector<1x128xf32>
    %cst_6 = arith.constant dense<0.000000e+00> : vector<1x8xf32>
    %6 = tpu.matmul %5, %4, %cst_6 {dimension_numbers = #tpu.dot_dimension_numbers<[1], [1], [0], [0], [0, 0, 1, 0], [], []>} : vector<1x128xf32>, vector<8x128xf32>, vector<1x8xf32> -> vector<1x8xf32>
    %c0_7 = arith.constant 0 : index
    %c1 = arith.constant 1 : index
    %c0_8 = arith.constant 0 : index
    %7 = vector.load %arg2[%c0_7, %c1, %c0_8] : memref<8x8x128xf32, #tpu.memory_space<vmem>>, vector<8x1x128xf32>
    %8 = vector.shape_cast %7 : vector<8x1x128xf32> to vector<8x128xf32>
    %9 = vector.extract_strided_slice %2 {offsets = [1, 0], sizes = [1, 128], strides = [1, 1]} : vector<8x128xf32> to vector<1x128xf32>
    %cst_9 = arith.constant dense<0.000000e+00> : vector<1x8xf32>
    %10 = tpu.matmul %9, %8, %cst_9 {dimension_numbers = #tpu.dot_dimension_numbers<[1], [1], [0], [0], [0, 0, 1, 0], [], []>} : vector<1x128xf32>, vector<8x128xf32>, vector<1x8xf32> -> vector<1x8xf32>
    %c0_10 = arith.constant 0 : index
    %c2 = arith.constant 2 : index
    %c0_11 = arith.constant 0 : index
    %11 = vector.load %arg2[%c0_10, %c2, %c0_11] : memref<8x8x128xf32, #tpu.memory_space<vmem>>, vector<8x1x128xf32>
    %12 = vector.shape_cast %11 : vector<8x1x128xf32> to vector<8x128xf32>
    %13 = vector.extract_strided_slice %2 {offsets = [2, 0], sizes = [1, 128], strides = [1, 1]} : vector<8x128xf32> to vector<1x128xf32>
    %cst_12 = arith.constant dense<0.000000e+00> : vector<1x8xf32>
    %14 = tpu.matmul %13, %12, %cst_12 {dimension_numbers = #tpu.dot_dimension_numbers<[1], [1], [0], [0], [0, 0, 1, 0], [], []>} : vector<1x128xf32>, vector<8x128xf32>, vector<1x8xf32> -> vector<1x8xf32>
    %c0_13 = arith.constant 0 : index
    %c3 = arith.constant 3 : index
    %c0_14 = arith.constant 0 : index
    %15 = vector.load %arg2[%c0_13, %c3, %c0_14] : memref<8x8x128xf32, #tpu.memory_space<vmem>>, vector<8x1x128xf32>
    %16 = vector.shape_cast %15 : vector<8x1x128xf32> to vector<8x128xf32>
    %17 = vector.extract_strided_slice %2 {offsets = [3, 0], sizes = [1, 128], strides = [1, 1]} : vector<8x128xf32> to vector<1x128xf32>
    %cst_15 = arith.constant dense<0.000000e+00> : vector<1x8xf32>
    %18 = tpu.matmul %17, %16, %cst_15 {dimension_numbers = #tpu.dot_dimension_numbers<[1], [1], [0], [0], [0, 0, 1, 0], [], []>} : vector<1x128xf32>, vector<8x128xf32>, vector<1x8xf32> -> vector<1x8xf32>
    %c0_16 = arith.constant 0 : index
    %c4 = arith.constant 4 : index
    %c0_17 = arith.constant 0 : index
    %19 = vector.load %arg2[%c0_16, %c4, %c0_17] : memref<8x8x128xf32, #tpu.memory_space<vmem>>, vector<8x1x128xf32>
    %20 = vector.shape_cast %19 : vector<8x1x128xf32> to vector<8x128xf32>
    %21 = vector.extract_strided_slice %2 {offsets = [4, 0], sizes = [1, 128], strides = [1, 1]} : vector<8x128xf32> to vector<1x128xf32>
    %cst_18 = arith.constant dense<0.000000e+00> : vector<1x8xf32>
    %22 = tpu.matmul %21, %20, %cst_18 {dimension_numbers = #tpu.dot_dimension_numbers<[1], [1], [0], [0], [0, 0, 1, 0], [], []>} : vector<1x128xf32>, vector<8x128xf32>, vector<1x8xf32> -> vector<1x8xf32>
    %c0_19 = arith.constant 0 : index
    %c5 = arith.constant 5 : index
    %c0_20 = arith.constant 0 : index
    %23 = vector.load %arg2[%c0_19, %c5, %c0_20] : memref<8x8x128xf32, #tpu.memory_space<vmem>>, vector<8x1x128xf32>
    %24 = vector.shape_cast %23 : vector<8x1x128xf32> to vector<8x128xf32>
    %25 = vector.extract_strided_slice %2 {offsets = [5, 0], sizes = [1, 128], strides = [1, 1]} : vector<8x128xf32> to vector<1x128xf32>
    %cst_21 = arith.constant dense<0.000000e+00> : vector<1x8xf32>
    %26 = tpu.matmul %25, %24, %cst_21 {dimension_numbers = #tpu.dot_dimension_numbers<[1], [1], [0], [0], [0, 0, 1, 0], [], []>} : vector<1x128xf32>, vector<8x128xf32>, vector<1x8xf32> -> vector<1x8xf32>
    %c0_22 = arith.constant 0 : index
    %c6 = arith.constant 6 : index
    %c0_23 = arith.constant 0 : index
    %27 = vector.load %arg2[%c0_22, %c6, %c0_23] : memref<8x8x128xf32, #tpu.memory_space<vmem>>, vector<8x1x128xf32>
    %28 = vector.shape_cast %27 : vector<8x1x128xf32> to vector<8x128xf32>
    %29 = vector.extract_strided_slice %2 {offsets = [6, 0], sizes = [1, 128], strides = [1, 1]} : vector<8x128xf32> to vector<1x128xf32>
    %cst_24 = arith.constant dense<0.000000e+00> : vector<1x8xf32>
    %30 = tpu.matmul %29, %28, %cst_24 {dimension_numbers = #tpu.dot_dimension_numbers<[1], [1], [0], [0], [0, 0, 1, 0], [], []>} : vector<1x128xf32>, vector<8x128xf32>, vector<1x8xf32> -> vector<1x8xf32>
    %c0_25 = arith.constant 0 : index
    %c7 = arith.constant 7 : index
    %c0_26 = arith.constant 0 : index
    %31 = vector.load %arg2[%c0_25, %c7, %c0_26] : memref<8x8x128xf32, #tpu.memory_space<vmem>>, vector<8x1x128xf32>
    %32 = vector.shape_cast %31 : vector<8x1x128xf32> to vector<8x128xf32>
    %33 = vector.extract_strided_slice %2 {offsets = [7, 0], sizes = [1, 128], strides = [1, 1]} : vector<8x128xf32> to vector<1x128xf32>
    %cst_27 = arith.constant dense<0.000000e+00> : vector<1x8xf32>
    %34 = tpu.matmul %33, %32, %cst_27 {dimension_numbers = #tpu.dot_dimension_numbers<[1], [1], [0], [0], [0, 0, 1, 0], [], []>} : vector<1x128xf32>, vector<8x128xf32>, vector<1x8xf32> -> vector<1x8xf32>
    %35 = tpu.concatenate %6, %10, %14, %18, %22, %26, %30, %34 in 0 : vector<1x8xf32>, vector<1x8xf32>, vector<1x8xf32>, vector<1x8xf32>, vector<1x8xf32>, vector<1x8xf32>, vector<1x8xf32>, vector<1x8xf32> -> vector<8x8xf32>
    %cst_28 = arith.constant dense<0xFF800000> : vector<8xf32>
    %36 = vector.multi_reduction <maximumf>, %35, %cst_28 [1] : vector<8x8xf32> to vector<8xf32>
    %37 = vector.shape_cast %36 : vector<8xf32> to vector<8x1xf32>
    %38 = vector.broadcast %37 : vector<8x1xf32> to vector<8x8xf32>
    %39 = arith.subf %35, %38 : vector<8x8xf32>
    %40 = math.exp %39 : vector<8x8xf32>
    %cst_29 = arith.constant dense<0.000000e+00> : vector<8xf32>
    %41 = vector.multi_reduction <add>, %40, %cst_29 [1] : vector<8x8xf32> to vector<8xf32>
    %42 = vector.shape_cast %41 : vector<8xf32> to vector<8x1xf32>
    %43 = tpu.reciprocal %42 : vector<8x1xf32> -> vector<8x1xf32>
    %44 = vector.broadcast %43 : vector<8x1xf32> to vector<8x8xf32>
    %45 = arith.mulf %40, %44 : vector<8x8xf32>
    %c0_30 = arith.constant 0 : index
    %c0_31 = arith.constant 0 : index
    %46 = vector.load %arg4[%c0_30, %c0_31] : memref<8x8xf32, #tpu.memory_space<vmem>>, vector<8x8xf32>
    tpu.vector_store %arg4[%c0_30, %c0_31], %45 {strides = array<i32>} : memref<8x8xf32, #tpu.memory_space<vmem>>, vector<8x8xf32>,
    return
  }
  func.func @transform_0(%arg0: i32) -> (i32, i32) {
    %c0_i32 = arith.constant 0 : i32
    %c0_i32_0 = arith.constant 0 : i32
    return %arg0, %c0_i32 : i32, i32
  }
  func.func @transform_1(%arg0: i32) -> (i32, i32, i32) {
    %c0_i32 = arith.constant 0 : i32
    %c0_i32_0 = arith.constant 0 : i32
    %c0_i32_1 = arith.constant 0 : i32
    return %c0_i32, %arg0, %c0_i32_0 : i32, i32, i32
  }
  func.func @transform_2(%arg0: i32) -> (i32, i32) {
    %c0_i32 = arith.constant 0 : i32
    %c0_i32_0 = arith.constant 0 : i32
    %c0_i32_1 = arith.constant 0 : i32
    return %c0_i32, %c0_i32_0 : i32, i32
  }
  func.func @transform_3(%arg0: i32) -> (i32, i32) {
    %c0_i32 = arith.constant 0 : i32
    %c0_i32_0 = arith.constant 0 : i32
    return %arg0, %c0_i32 : i32, i32
  }
}

</mosaic_0001>

<bundles_post_ra>
// kernel: attn_forward.1
= control target key start
LH: loop header
LB: loop body
LE: loop exit
PB: predicated region body
PF: predicated region fallthrough
CT: control target
= control target key end

     0   :  { %8 = vsyncpa [#allocation3], 0  ;;  %s2036_s0 = inlined_call_operand.hbm [shape: f32[16,128], index: 0, kind: input, shape index: {}]   ;;  %s2037_s1 = inlined_call_operand.hbm [shape: f32[8,16,128], index: 1, kind: input, shape index: {}]   ;;  %s2038_s2 = inlined_call_operand.hbm [shape: f32[128,128], index: 2, kind: input, shape index: {}]   ;;  %s2039_s3 = inlined_call_operand.vmem [shape: f32[16,8], index: 3, kind: output, shape index: {}]  }
   0x1   :  { %10 = vsyncpa [#allocation3 + $0x1], 0 }
   0x2   :  { %11 = vsyncpa [#allocation5], 0 }
   0x3   :  { %13 = vsyncpa [#allocation5 + $0x1], 0  ;;  %s1674_s12 = smov 0   ;;  %s1676_s13 = smov 0  }
   0x4   :  { %s1678_s14 = smov 0   ;;  %s1680_s15 = smov 0  }
   0x5 LB: > { %s1693_s16 = sadd.s32 4294967295, %s1643_s15   ;;  %p39_p0 = scmp.ne.s32.totalorder %s1635_s13, %s1631_s12  ;;  %s1643_s15 = sphi %s1680_s15, %s2054_s15   ;;  %s1639_s14 = sphi %s1678_s14, %s2053_s14   ;;  %s1635_s13 = sphi %s1676_s13, %s2052_s13   ;;  %s1631_s12 = sphi %s1674_s12, %s2051_s12  }
   0x6   : > { %p2040_p1 = scmp.eq.s32.totalorder %s1693_s16, 0  ;;  %p1302_p2 = scmp.ge.s32.totalorder %s1643_s15, 1 }
   0x7   : > { %p123_p3 = scmp.lt.s32.totalorder %s1643_s15, 3  ;;  %s1645_s19 = smov [#allocation6]  }
   0x8   : > { %p1701_p4 = por %p2040_p1, %p39_p0  ;;  %s135_s20 = sshll.u32 %s1645_s19, 4  ;;  %s136_s20 = int_to_ptr.vmem [resolvable:$true] %s135_s20 }
   0x9   : > { %p1705_p5 = pnand %p1302_p2, %p123_p3  ;;  %s1718_s22 = sadd.s32 1, %s1643_s15  }
   0xa   : > { %s2043_s17 = scalar_select %p1701_p4, 1, 0 }
   0xb   : > { %s2044_s18 = scalar_select %p1705_p5, 1, 0 }
   0xc   : > { %p1456_p6 = pneg %p1705_p5  ;;  %s26_s23 = sadd.s32 1, %s1639_s14 }
   0xd   : > { %s23_s24 = ssub.s32 %s1643_s15, %s1718_s22  ;;  %s1513_s27 = scalar_lea.hbm %s2038_s2, 2048 }
   0xe   : > { %p1713_p7 = pnand %p1456_p6, %p2040_p1  ;;  %p1514_p8 = scmp.ne.s32.totalorder %s2038_s2, %s1513_s27 }
   0xf   : > { %p1520_p12 = scmp.lt.u32.totalorder %s1513_s27, %s2038_s2 }
  0x10   : > { %p1515_p9 = pneg %p1713_p7 }
  0x12   : > { %p1516_p10 = pnand %p1515_p9, %p1514_p8 }
  0x14   : > { %p1517_p11 = pneg %p1516_p10 }
  0x16   : > { %p1522_p13 = pnand %p1520_p12, %p1517_p11 }
  0x18   : > { %1525 = shalt.err (!%p1522_p13)
}
  0x19   : > { %s1526_s5 = scalar_lea.vmem %s136_s20, 2048  ;;  %p1534_p6 = scmp.lt.s32.totalorder %s136_s20, %s136_s20 }
  0x1a   : > { %p1527_p0 = scmp.ne.s32.totalorder %s136_s20, %s1526_s5  ;;  %p1535_p1 = scmp.lt.s32.totalorder %s1526_s5, %s1526_s5 }
  0x1c   : > { %p1529_p2 = pnand %p1527_p0, %p1515_p9  ;;  %p1536_p4 = por %p1535_p1, %p1534_p6 }
  0x1e   : > { %p1530_p3 = pneg %p1529_p2 }
  0x20   : > { %p1537_p5 = pnand %p1536_p4, %p1530_p3 }
  0x22   : > { %1540 = shalt.err (!%p1537_p5)
}
  0x23   : > { %s1646_s6 = smov 128   ;;  %s1647_s7 = smov 8  }
  0x24   : > { %1459 = dma.hbm_to_vmem [thread:$0]  (!%p1713_p7), %s2038_s2, 2048, %s136_s20, [#allocation5], %s1646_s6, %s1646_s6, %s1647_s7  }
  0x25   : > { %p24_p1 = scmp.eq.s32.totalorder %s23_s24, 0  ;;  %p33_p4 = scmp.ne.s32.totalorder %s1639_s14, %s1635_s13 }
  0x26   : > { %p34_p5 = scmp.eq.s32.totalorder %s1643_s15, 0  ;;  %p1468_p8 = scmp.lt.s32.totalorder %s1643_s15, 2 }
  0x27   : > { %s1747_s10 = scalar_select %p24_p1, %s1639_s14, %s26_s23  }
  0x28   : > { %p35_p9 = por %p34_p5, %p33_p4  ;;  %s1750_s11 = sand.u32 1, %s1639_s14  }
  0x29   : > { %s1305_s12 = sshll.u32 %s1750_s11, 3  ;;  %s1306_s19 = sshll.u32 %s1643_s15, 7 }
  0x2a   : > { %s1757_s26 = scalar_lea.hbm %s2036_s0, %s1306_s19  ;;  %s153_s20 = scalar_lea.vmem [#allocation2], %s1305_s12 }
  0x2b   : > { %s160_s23 = sshll.u32 %s153_s20, 4  ;;  %p1761_p7 = pnand %p1468_p8, %p35_p9  ;;  %s1759_s23 = int_to_ptr.vmem [resolvable:$true] %s160_s23 }
  0x2c   : > { %s1307_s27 = sshll.u32 %s1750_s11, 6  ;;  %s1769_s30 = scalar_lea.hbm %s2037_s1, %s1306_s19 }
  0x2d   : > { %s150_s4 = scalar_lea.sflag [#allocation3], %s1750_s11  ;;  %s1541_s5 = scalar_lea.hbm %s1757_s26, 128 }
  0x2e   : > { %p1542_p10 = scmp.ne.s32.totalorder %s1757_s26, %s1541_s5  ;;  %p1543_p11 = pneg %p1761_p7 }
  0x2f   : > { %s1546_s12 = scalar_lea.hbm %s2036_s0, 256  ;;  %p1547_p0 = scmp.lt.u32.totalorder %s1757_s26, %s2036_s0 }
  0x30   : > { %p1544_p12 = pnand %p1543_p11, %p1542_p10  ;;  %p1548_p2 = scmp.lt.u32.totalorder %s1546_s12, %s1541_s5 }
  0x31   : > { %p1550_p6 = scmp.lt.u32.totalorder %s1541_s5, %s1757_s26 }
  0x32   : > { %p1545_p13 = pneg %p1544_p12  ;;  %p1549_p3 = por %p1548_p2, %p1547_p0 }
  0x34   : > { %p1551_p1 = por %p1550_p6, %p1549_p3 }
  0x36   : > { %p1552_p4 = pnand %p1551_p1, %p1545_p13 }
  0x38   : > { %1555 = shalt.err (!%p1552_p4)
}
  0x39   : > { %s1556_s19 = scalar_lea.vmem %s1759_s23, 128  ;;  %s1648_s20 = smov [#allocation2]  }
  0x3a   : > { %p1557_p5 = scmp.ne.s32.totalorder %s1759_s23, %s1556_s19  ;;  %s1561_s28 = sshll.u32 %s1648_s20, 4  ;;  %s1562_s28 = int_to_ptr.vmem [resolvable:$false] %s1561_s28 }
  0x3b   : > { %s1563_s29 = scalar_lea.vmem %s1562_s28, 256  ;;  %p1564_p10 = scmp.lt.s32.totalorder %s1759_s23, %s1562_s28 }
  0x3c   : > { %p1559_p8 = pnand %p1557_p5, %p1543_p11  ;;  %p1565_p12 = scmp.lt.s32.totalorder %s1563_s29, %s1556_s19 }
  0x3e   : > { %p1560_p9 = pneg %p1559_p8  ;;  %p1566_p0 = por %p1565_p12, %p1564_p10 }
  0x40   : > { %p1567_p2 = pnand %p1566_p0, %p1560_p9 }
  0x42   : > { %1570 = shalt.err (!%p1567_p2)
}
  0x43   : > { %1463 = dma.hbm_to_vmem [thread:$0]  (!%p1761_p7), %s1757_s26, 128, %s1759_s23, %s150_s4  }
  0x44   : > { %s171_s5 = scalar_lea.vmem [#allocation4], %s1307_s27  ;;  %s167_s9 = sand.u32 1, %s1643_s15  }
  0x45   : > { %s177_s8 = sshll.u32 %s171_s5, 4  ;;  %s1802_s12 = scalar_lea.sflag [#allocation5], %s167_s9  ;;  %s1800_s8 = int_to_ptr.vmem [resolvable:$true] %s177_s8 }
  0x46   : > { %s1571_s21 = scalar_lea.hbm %s1769_s30, 1024  ;;  %s1576_s20 = scalar_lea.hbm %s2037_s1, 2048 }
  0x47   : > { %p1572_p13 = scmp.ne.s32.totalorder %s1769_s30, %s1571_s21  ;;  %p1577_p1 = scmp.lt.u32.totalorder %s1769_s30, %s2037_s1 }
  0x48   : > { %p1578_p4 = scmp.lt.u32.totalorder %s1576_s20, %s1571_s21  ;;  %p1580_p8 = scmp.lt.u32.totalorder %s1571_s21, %s1769_s30 }
  0x49   : > { %p1574_p3 = pnand %p1572_p13, %p1543_p11 }
  0x4a   : > { %p1579_p5 = por %p1578_p4, %p1577_p1 }
  0x4b   : > { %p1575_p6 = pneg %p1574_p3 }
  0x4c   : > { %p1581_p9 = por %p1580_p8, %p1579_p5 }
  0x4e   : > { %p1582_p10 = pnand %p1581_p9, %p1575_p6 }
  0x50   : > { %1585 = shalt.err (!%p1582_p10)
}
  0x51   : > { %s1586_s15 = scalar_lea.vmem %s1800_s8, 1024  ;;  %s1649_s11 = smov [#allocation4]  }
  0x52   : > { %p1587_p12 = scmp.ne.s32.totalorder %s1800_s8, %s1586_s15  ;;  %s1591_s23 = sshll.u32 %s1649_s11, 4  ;;  %s1592_s23 = int_to_ptr.vmem [resolvable:$false] %s1591_s23 }
  0x53   : > { %s1593_s27 = scalar_lea.vmem %s1592_s23, 2048  ;;  %p1594_p13 = scmp.lt.s32.totalorder %s1800_s8, %s1592_s23 }
  0x54   : > { %p1589_p0 = pnand %p1587_p12, %p1543_p11  ;;  %p1595_p3 = scmp.lt.s32.totalorder %s1593_s27, %s1586_s15 }
  0x56   : > { %p1590_p2 = pneg %p1589_p0  ;;  %p1596_p1 = por %p1595_p3, %p1594_p13 }
  0x58   : > { %p1597_p4 = pnand %p1596_p1, %p1590_p2 }
  0x5a   : > { %1600 = shalt.err (!%p1597_p4)
}
  0x5b   : > { %s1650_s4 = smov 256   ;;  %p2047_p11 = scmp.ne.s32.totalorder %s2044_s18, 0 }
  0x5c   : > { %1466 = dma.hbm_to_vmem [thread:$0]  (!%p1761_p7), %s1769_s30, 1024, %s1800_s8, %s1802_s12, %s1650_s4, %s1646_s6, %s1647_s7  }
  0x5d   : > { %189 = sbr.rel (%p2047_p11) target bundleno = 911 (0x38f), region = 32  ;;  %s191_s29 = sand.u32 (!%p2047_p11), 1, %s1635_s13  }
  0x5e   : > { %s1310_s5 = sshll.u32 (!%p2047_p11), %s191_s29, 3  ;;  %s192_s9 = scalar_lea.sflag (!%p2047_p11), [#allocation3], %s191_s29 }
  0x5f   : > { %s1833_s21 = scalar_lea.vmem (!%p2047_p11), [#allocation2], %s1310_s5  ;;  %p2048_p6 = scmp.ne.s32.totalorder (!%p2047_p11), %s2043_s17, 0 }
  0x64   : > { %1618 = dma.done.wait (%p2048_p6), %s192_s9, 128  }
  0x65   : > { %1620 = vsyncadd (%p2048_p6), %s192_s9, 4294967168  ;;  %s200_s24 = sand.u32 1, %s1693_s16   ;;  %s1311_s25 = sshll.u32 %s191_s29, 6 }
  0x66   : > { %s201_s6 = scalar_lea.sflag [#allocation5], %s200_s24  ;;  %s1840_s7 = scalar_lea.vmem [#allocation4], %s1311_s25 }
  0x67   : > { %1622 = dma.done.wait (%p2048_p6), %s201_s6, 1024  }
  0x68   : > { %1624 = vsyncadd (%p2048_p6), %s201_s6, 4294966272  ;;  %p2049_p7 = scmp.eq.s32.totalorder %s1693_s16, 0 }
  0x6a   : > { %1626 = dma.done.wait (%p2049_p7), [#allocation5], 2048   ;;  %p2050_p5 = pmov %p2049_p7 }
  0x6b   : > { %v1651_v0 = vmov 0.0|0.0   ;;  %vm1652_vm0 = vmmov 0   ;;  %v1653_v1 = vmov 0.0   ;;  %v240_v2 = vld [vmem:[#allocation6] sm:$0xff]  ;;  %v241_v3 = vld [vmem:[#allocation6 + $0x8] sm:$0xff]  ;;  %v242_v4 = vld [vmem:[#allocation6 + $0x10] sm:$0xff] }
  0x6c   : > { %1628 = vsyncadd (%p2050_p5), [#allocation5], 4294965248  ;;  %1424 = vmatprep.subr.bf16.mxu0 %v1651_v0  ;;  %1381 = vmatprep.mubr.msk.f32.mxu0 %vm1652_vm0, %v1653_v1  ;;  %v1425_v5 = vpack.c.bf16 %v241_v3, %v240_v2  ;;  %v243_v6 = vld [vmem:[#allocation6 + $0x18] sm:$0xff]  ;;  %v244_v8 = vld [vmem:[#allocation6 + $0x20] sm:$0xff]  ;;  %vm343_vm1 = vcmask 1041409   ;;  %vm346_vm2 = vcmask 1042434  }
  0x6d   : > { %1384 = vmatprep.subr.mxu1 %v1653_v1  ;;  %1386 = vmatprep.mubr.msk.f32.mxu1 %vm1652_vm0, %v1653_v1  ;;  %v1428_v7 = vpack.c.bf16 %v243_v6, %v242_v4  ;;  %v245_v9 = vld [vmem:[#allocation6 + $0x28] sm:$0xff]  ;;  %v246_v10 = vld [vmem:[#allocation6 + $0x30] sm:$0xff]  ;;  %v329_v13 = vld [vmem:[%s1840_s7 + $0x18] sm:$0x1]  ;;  %vm349_vm3 = vcmask 1043459   ;;  %vm352_vm4 = vcmask 1044484  }
  0x6e   : > { %1426 = vmatpush3.bf16.msra.mxu0 %v1425_v5  ;;  %v327_v11 = vld [vmem:[%s1840_s7 + $0x8] sm:$0x1]  ;;  %v328_v12 = vld [vmem:[%s1840_s7 + $0x10] sm:$0x1]  ;;  %v1431_v14 = vpack.c.bf16 %v245_v9, %v244_v8  ;;  %v326_v15 = vld [vmem:[%s1840_s7] sm:$0x1] }
  0x6f   : > { %1427 = vmatprep.subr.bf16.mxu0 %v1651_v0  ;;  %v330_v16 = vld [vmem:[%s1840_s7 + $0x20] sm:$0x1]  ;;  %v331_v17 = vld [vmem:[%s1840_s7 + $0x28] sm:$0x1]  ;;  %v247_v18 = vld [vmem:[#allocation6 + $0x38] sm:$0xff]  ;;  %v342_v20 = vrot.slane %v327_v11, 7 }
  0x70   : > { %v332_v19 = vld [vmem:[%s1840_s7 + $0x30] sm:$0x1]  ;;  %v345_v21 = vrot.slane %v328_v12, 6  ;;  %v348_v22 = vrot.slane %v329_v13, 5  ;;  %v333_v23 = vld [vmem:[%s1840_s7 + $0x38] sm:$0x1]  ;;  %v1434_v27 = vpack.c.bf16 %v247_v18, %v246_v10 }
  0x71   : > { %v351_v24 = vrot.slane %v330_v16, 4  ;;  %v344_v25 = vsel %vm343_vm1, %v342_v20, %v326_v15  ;;  %v354_v26 = vrot.slane %v331_v17, 3  ;;  %vm355_vm5 = vcmask 1045509   ;;  %v248_v30 = vld [vmem:[#allocation6 + $0x40] sm:$0xff]  ;;  %v249_v31 = vld [vmem:[#allocation6 + $0x48] sm:$0xff]  ;;  %v250_v38 = vld [vmem:[#allocation6 + $0x50] sm:$0xff] }
  0x72   : > { %1429 = vmatpush3.bf16.msra.mxu0 %v1428_v7  ;;  %v347_v28 = vsel %vm346_vm2, %v345_v21, %v344_v25  ;;  %v357_v29 = vrot.slane %v332_v19, 2  ;;  %vm358_vm6 = vcmask 1046534   ;;  %v360_v33 = vrot.slane %v333_v23, 1  ;;  %v251_v39 = vld [vmem:[#allocation6 + $0x58] sm:$0xff]  ;;  %v252_v42 = vld [vmem:[#allocation6 + $0x60] sm:$0xff]  ;;  %v253_v43 = vld [vmem:[#allocation6 + $0x68] sm:$0xff] }
  0x73   : > { %1430 = vmatprep.subr.bf16.mxu0 %v1651_v0  ;;  %v350_v32 = vsel %vm349_vm3, %v348_v22, %v347_v28  ;;  %vm361_vm7 = vcmask 1047559   ;;  %v1437_v36 = vpack.c.bf16 %v249_v31, %v248_v30  ;;  %v1440_v41 = vpack.c.bf16 %v251_v39, %v250_v38  ;;  %v254_v45 = vld [vmem:[#allocation6 + $0x70] sm:$0xff]  ;;  %v255_v46 = vld [vmem:[#allocation6 + $0x78] sm:$0xff]  ;;  %v435_v49 = vld [vmem:[%s1840_s7 + $0x9] sm:$0x1]  ;;  %p235_p8 = scmp.lt.s32.totalorder %s1693_s16, 1 }
  0x74   : > { %v353_v34 = vsel %vm352_vm4, %v351_v24, %v350_v32  ;;  %v1443_v44 = vpack.c.bf16 %v253_v43, %v252_v42  ;;  %v1446_v47 = vpack.c.bf16 %v255_v46, %v254_v45  ;;  %v239_v48 = vld [vmem:[%s1833_s21] sm:$0xff]  ;;  %v453_v51 = vrot.slane %v435_v49, 7  ;;  %v434_v52 = vld [vmem:[%s1840_s7 + $0x1] sm:$0x1]  ;;  %v539_v53 = vld [vmem:[%s1840_s7 + $0xa] sm:$0x1] }
  0x75   : > { %v356_v35 = vsel %vm355_vm5, %v354_v26, %v353_v34  ;;  %v436_v50 = vld [vmem:[%s1840_s7 + $0x11] sm:$0x1]  ;;  %v437_v54 = vld [vmem:[%s1840_s7 + $0x19] sm:$0x1]  ;;  %v540_v57 = vld [vmem:[%s1840_s7 + $0x12] sm:$0x1] }
  0x76   : > { %1432 = vmatpush3.bf16.msra.mxu0 %v1431_v14  ;;  %v359_v37 = vsel %vm358_vm6, %v357_v29, %v356_v35  ;;  %v455_v55 = vrot.slane %v436_v50, 6  ;;  %v454_v56 = vsel %vm343_vm1, %v453_v51, %v434_v52  ;;  %v556_v58 = vrot.slane %v539_v53, 7  ;;  %v538_v59 = vld [vmem:[%s1840_s7 + $0x2] sm:$0x1]  ;;  %v642_v60 = vld [vmem:[%s1840_s7 + $0xb] sm:$0x1] }
  0x77   : > { %1433 = vmatprep.subr.bf16.mxu0 %v1651_v0  ;;  %v362_v40 = vsel %vm361_vm7, %v360_v33, %v359_v37  ;;  %v438_v61 = vld [vmem:[%s1840_s7 + $0x21] sm:$0x1]  ;;  %v457_v62 = vrot.slane %v437_v54, 5  ;;  %v558_v2 = vrot.slane %v540_v57, 6  ;;  %v643_v4 = vld [vmem:[%s1840_s7 + $0x13] sm:$0x1] }
  0x78   : > { %1385 = vmatpush3.xpose.msra.mxu1 %v362_v40  ;;  %v456_v63 = vsel %vm346_vm2, %v455_v55, %v454_v56  ;;  %v557_v3 = vsel %vm343_vm1, %v556_v58, %v538_v59  ;;  %v659_v5 = vrot.slane %v642_v60, 7  ;;  %v439_v6 = vld [vmem:[%s1840_s7 + $0x29] sm:$0x1]  ;;  %v459_v7 = vrot.slane %v438_v61, 4  ;;  %v641_v8 = vld [vmem:[%s1840_s7 + $0x3] sm:$0x1] }
  0x79   : > { %1389 = vmatprep.subr.mxu1 %v1653_v1  ;;  %v458_v9 = vsel %vm349_vm3, %v457_v62, %v456_v63  ;;  %v542_v10 = vld [vmem:[%s1840_s7 + $0x22] sm:$0x1]  ;;  %v745_v12 = vld [vmem:[%s1840_s7 + $0xc] sm:$0x1]  ;;  %v559_v13 = vsel %vm346_vm2, %v558_v2, %v557_v3  ;;  %v644_v14 = vld [vmem:[%s1840_s7 + $0x1b] sm:$0x1] }
  0x7a   : > { %1435 = vmatpush3.bf16.msra.mxu0 %v1434_v27  ;;  %v661_v15 = vrot.slane %v643_v4, 6  ;;  %v440_v16 = vld [vmem:[%s1840_s7 + $0x31] sm:$0x1]  ;;  %v461_v17 = vrot.slane %v439_v6, 3  ;;  %v543_v18 = vld [vmem:[%s1840_s7 + $0x2a] sm:$0x1]  ;;  %v660_v19 = vsel %vm343_vm1, %v659_v5, %v641_v8  ;;  %v460_v20 = vsel %vm352_vm4, %v459_v7, %v458_v9 }
  0x7b   : > { %1436 = vmatprep.subr.bf16.mxu0 %v1651_v0  ;;  %v562_v21 = vrot.slane %v542_v10, 4  ;;  %v645_v22 = vld [vmem:[%s1840_s7 + $0x23] sm:$0x1]  ;;  %v746_v23 = vld [vmem:[%s1840_s7 + $0x14] sm:$0x1]  ;;  %v762_v24 = vrot.slane %v745_v12, 7 }
  0x7c   : > { %v663_v26 = vrot.slane %v644_v14, 5  ;;  %v744_v27 = vld [vmem:[%s1840_s7 + $0x4] sm:$0x1]  ;;  %v848_v28 = vld [vmem:[%s1840_s7 + $0xd] sm:$0x1]  ;;  %v463_v30 = vrot.slane %v440_v16, 2  ;;  %v662_v31 = vsel %vm346_vm2, %v661_v15, %v660_v19  ;;  %v462_v32 = vsel %vm355_vm5, %v461_v17, %v460_v20 }
  0x7d   : > { %v441_v29 = vld [vmem:[%s1840_s7 + $0x39] sm:$0x1]  ;;  %v544_v33 = vld [vmem:[%s1840_s7 + $0x32] sm:$0x1]  ;;  %v564_v34 = vrot.slane %v543_v18, 3  ;;  %v665_v39 = vrot.slane %v645_v22, 4  ;;  %v763_v40 = vsel %vm343_vm1, %v762_v24, %v744_v27 }
  0x7e   : > { %1438 = vmatpush3.bf16.msra.mxu0 %v1437_v36  ;;  %v747_v35 = vld [vmem:[%s1840_s7 + $0x1c] sm:$0x1]  ;;  %v764_v36 = vrot.slane %v746_v23, 6  ;;  %v646_v38 = vld [vmem:[%s1840_s7 + $0x2b] sm:$0x1]  ;;  %v865_v42 = vrot.slane %v848_v28, 7 }
  0x7f   : > { %1439 = vmatprep.subr.bf16.mxu0 %v1651_v0  ;;  %v465_v43 = vrot.slane %v441_v29, 1  ;;  %v847_v45 = vld [vmem:[%s1840_s7 + $0x5] sm:$0x1]  ;;  %v951_v46 = vld [vmem:[%s1840_s7 + $0xe] sm:$0x1]  ;;  %v566_v49 = vrot.slane %v544_v33, 2 }
  0x80   : > { %v748_v50 = vld [vmem:[%s1840_s7 + $0x24] sm:$0x1]  ;;  %v766_v51 = vrot.slane %v747_v35, 5  ;;  %v647_v53 = vld [vmem:[%s1840_s7 + $0x33] sm:$0x1]  ;;  %v667_v54 = vrot.slane %v646_v38, 3  ;;  %v765_v55 = vsel %vm346_vm2, %v764_v36, %v763_v40  ;;  %v866_v60 = vsel %vm343_vm1, %v865_v42, %v847_v45 }
  0x81   : > { %v850_v56 = vld [vmem:[%s1840_s7 + $0x1d] sm:$0x1]  ;;  %v749_v59 = vld [vmem:[%s1840_s7 + $0x2c] sm:$0x1]  ;;  %v952_v61 = vld [vmem:[%s1840_s7 + $0x16] sm:$0x1] }
  0x82   : > { %1441 = vmatpush3.bf16.msra.mxu0 %v1440_v41  ;;  %v849_v41 = vld [vmem:[%s1840_s7 + $0x15] sm:$0x1]  ;;  %v968_v62 = vrot.slane %v951_v46, 7  ;;  %v768_v2 = vrot.slane %v748_v50, 4  ;;  %v950_v3 = vld [vmem:[%s1840_s7 + $0x6] sm:$0x1]  ;;  %v767_v8 = vsel %vm349_vm3, %v766_v51, %v765_v55 }
  0x83   : > { %1442 = vmatprep.subr.bf16.mxu0 %v1651_v0  ;;  %v867_v57 = vrot.slane %v849_v41, 6  ;;  %v1054_v4 = vld [vmem:[%s1840_s7 + $0xf] sm:$0x1]  ;;  %v648_v6 = vld [vmem:[%s1840_s7 + $0x3b] sm:$0x1]  ;;  %v669_v7 = vrot.slane %v647_v53, 2 }
  0x84   : > { %v851_v9 = vld [vmem:[%s1840_s7 + $0x25] sm:$0x1]  ;;  %v869_v10 = vrot.slane %v850_v56, 5  ;;  %v953_v15 = vld [vmem:[%s1840_s7 + $0x1e] sm:$0x1]  ;;  %v970_v16 = vrot.slane %v952_v61, 6  ;;  %v969_v19 = vsel %vm343_vm1, %v968_v62, %v950_v3  ;;  %v769_v24 = vsel %vm352_vm4, %v768_v2, %v767_v8 }
  0x85   : > { %v868_v14 = vsel %vm346_vm2, %v867_v57, %v866_v60  ;;  %v770_v18 = vrot.slane %v749_v59, 3  ;;  %v1055_v20 = vld [vmem:[%s1840_s7 + $0x17] sm:$0x1]  ;;  %v671_v23 = vrot.slane %v648_v6, 1  ;;  %v1053_v27 = vld [vmem:[%s1840_s7 + $0x7] sm:$0x1] }
  0x86   : > { %1444 = vmatpush3.bf16.msra.mxu0 %v1443_v44  ;;  %v664_v44 = vsel %vm349_vm3, %v663_v26, %v662_v31  ;;  %v871_v26 = vrot.slane %v851_v9, 4  ;;  %v954_v31 = vld [vmem:[%s1840_s7 + $0x26] sm:$0x1]  ;;  %v751_v33 = vld [vmem:[%s1840_s7 + $0x3c] sm:$0x1]  ;;  %v971_v35 = vsel %vm346_vm2, %v970_v16, %v969_v19  ;;  %vm1177_vm8 = vcmask 1040384  }
  0x87   : > { %1445 = vmatprep.subr.bf16.mxu0 %v1651_v0  ;;  %v541_v0 = vld [vmem:[%s1840_s7 + $0x1a] sm:$0x1]  ;;  %v666_v58 = vsel %vm352_vm4, %v665_v39, %v664_v44  ;;  %v1056_v36 = vld [vmem:[%s1840_s7 + $0x1f] sm:$0x1]  ;;  %v771_v38 = vsel %vm355_vm5, %v770_v18, %v769_v24  ;;  %v853_v39 = vld [vmem:[%s1840_s7 + $0x35] sm:$0x1] }
  0x88   : > { %v560_v11 = vrot.slane %v541_v0, 5  ;;  %v668_v12 = vsel %vm355_vm5, %v667_v54, %v666_v58  ;;  %v955_v44 = vld [vmem:[%s1840_s7 + $0x2e] sm:$0x1]  ;;  %v974_v45 = vrot.slane %v954_v31, 4  ;;  %v1075_v50 = vrot.slane %v1056_v36, 5  ;;  %s2056_s16 = smov (!%p235_p8, %s1693_s16), 1 }
  0x89   : > { %v670_v29 = vsel %vm358_vm6, %v669_v7, %v668_v12  ;;  %v875_v53 = vrot.slane %v853_v39, 2  ;;  %v956_v56 = vld [vmem:[%s1840_s7 + $0x36] sm:$0x1]  ;;  %v976_v57 = vrot.slane %v955_v44, 3  ;;  %v1058_v59 = vld [vmem:[%s1840_s7 + $0x2f] sm:$0x1] }
  0x8a   : > { %1447 = vmatpush3.bf16.msra.mxu0 %v1446_v47  ;;  %v561_v25 = vsel %vm349_vm3, %v560_v11, %v559_v13  ;;  %v464_v47 = vsel %vm358_vm6, %v463_v30, %v462_v32  ;;  %v750_v13 = vld [vmem:[%s1840_s7 + $0x34] sm:$0x1]  ;;  %v870_v30 = vsel %vm349_vm3, %v869_v10, %v868_v14  ;;  %v972_v32 = vrot.slane %v953_v15, 5  ;;  %v957_v3 = vld [vmem:[%s1840_s7 + $0x3e] sm:$0x1]  ;;  %s1313_s17 = sshll.u32 %s2056_s16, 3 }
  0x8b   : > { %v563_v37 = vsel %vm352_vm4, %v562_v21, %v561_v25  ;;  %v466_v63 = vsel %vm361_vm7, %v465_v43, %v464_v47  ;;  %v1071_v21 = vrot.slane %v1054_v4, 7  ;;  %v852_v25 = vld [vmem:[%s1840_s7 + $0x2d] sm:$0x1]  ;;  %v672_v42 = vsel %vm361_vm7, %v671_v23, %v670_v29  ;;  %v1059_v6 = vld [vmem:[%s1840_s7 + $0x37] sm:$0x1]  ;;  %s238_s8 = scalar_lea.vmem %s2039_s3, %s1313_s17 }
  0x8c   : > { %v565_v52 = vsel %vm355_vm5, %v564_v34, %v563_v37  ;;  %v772_v34 = vrot.slane %v750_v13, 2  ;;  %v1073_v37 = vrot.slane %v1055_v20, 6  ;;  %v873_v40 = vrot.slane %v852_v25, 3  ;;  %v1060_v14 = vld [vmem:[%s1840_s7 + $0x3f] sm:$0x1] }
  0x8d   : > { %1382 = vmatmul.mubr.f32.vlgmr.msra.gmra.mrb[0].mxu0 %v239_v48  ;;  %v545_v48 = vld [vmem:[%s1840_s7 + $0x3a] sm:$0x1]  ;;  %v567_v5 = vsel %vm358_vm6, %v566_v49, %v565_v52  ;;  %v1072_v41 = vsel %vm343_vm1, %v1071_v21, %v1053_v27  ;;  %v872_v43 = vsel %vm352_vm4, %v871_v26, %v870_v30  ;;  %v774_v47 = vrot.slane %v751_v33, 1  ;;  %v1057_v49 = vld [vmem:[%s1840_s7 + $0x27] sm:$0x1] }
  0x8e   : > { %v568_v0 = vrot.slane %v545_v48, 1  ;;  %v973_v48 = vsel %vm349_vm3, %v972_v32, %v971_v35  ;;  %v773_v51 = vsel %vm358_vm6, %v772_v34, %v771_v38  ;;  %v854_v52 = vld [vmem:[%s1840_s7 + $0x3d] sm:$0x1]  ;;  %v1074_v54 = vsel %vm346_vm2, %v1073_v37, %v1072_v41 }
  0x8f   : > { %v874_v55 = vsel %vm355_vm5, %v873_v40, %v872_v43  ;;  %v975_v58 = vsel %vm352_vm4, %v974_v45, %v973_v48  ;;  %v1077_v60 = vrot.slane %v1057_v49, 4  ;;  %v775_v62 = vsel %vm361_vm7, %v774_v47, %v773_v51 }
  0x90   : > { %v569_v22 = vsel %vm361_vm7, %v568_v0, %v567_v5  ;;  %v1076_v0 = vsel %vm349_vm3, %v1075_v50, %v1074_v54  ;;  %v876_v2 = vsel %vm358_vm6, %v875_v53, %v874_v55  ;;  %v978_v4 = vrot.slane %v956_v56, 2 }
  0x91   : > { %v977_v5 = vsel %vm355_vm5, %v976_v57, %v975_v58  ;;  %v1079_v7 = vrot.slane %v1058_v59, 3  ;;  %v1078_v8 = vsel %vm352_vm4, %v1077_v60, %v1076_v0  ;;  %v980_v12 = vrot.slane %v957_v3, 1 }
  0x92   : > { %v979_v13 = vsel %vm358_vm6, %v978_v4, %v977_v5  ;;  %v1081_v15 = vrot.slane %v1059_v6, 2  ;;  %v1083_v19 = vrot.slane %v1060_v14, 1  ;;  %vm1179_vm9 = vcmask 1041408  }
  0x93   : > { %v1080_v16 = vsel %vm355_vm5, %v1079_v7, %v1078_v8  ;;  %v981_v18 = vsel %vm361_vm7, %v980_v12, %v979_v13  ;;  %vm1181_vm10 = vcmask 1042432   ;;  %vm1183_vm11 = vcmask 1043456  }
  0x94   : > { %v1082_v20 = vsel %vm358_vm6, %v1081_v15, %v1080_v16  ;;  %vm1185_vm12 = vcmask 1044480   ;;  %vm1187_vm13 = vcmask 1045504   ;;  %vm1189_vm14 = vcmask 1046528  }
  0x95   : > { %vm1191_vm15 = vcmask 64512  }
 0x160   : > { %v1940_v11 = vpop.f32.mrb[0].mxu0 }
 0x161   : > { %v1383_v17 = vpop.f32.mrb[1].mxu0  ;;  %1387 = vmatmul.mubr.f32.vlgmr.msra.gmra.mrb[0].mxu1 %v1940_v11  ;;  %v443_v28 = vrot.slane %v1940_v11, 1  ;;  %v546_v46 = vrot.slane %v1940_v11, 2  ;;  %v649_v61 = vrot.slane %v1940_v11, 3  ;;  %v752_v9 = vrot.slane %v1940_v11, 4 }
 0x162   : > { %1390 = vmatpush3.xpose.msra.mxu1 %v466_v63  ;;  %1391 = vmatprep.mubr.msk.f32.mxu1 %vm1652_vm0, %v1653_v1  ;;  %v877_v63 = vrot.slane %v854_v52, 1  ;;  %v855_v17 = vrot.slane %v1940_v11, 5  ;;  %v958_v21 = vrot.slane %v1940_v11, 6  ;;  %v1061_v23 = vrot.slane %v1940_v11, 7 }
 0x163   : > { %1394 = vmatprep.subr.mxu1 %v1653_v1 }
 0x164   : > { %v878_v10 = vsel %vm361_vm7, %v877_v63, %v876_v2 }
 0x165   : > { %1392 = vmatmul.mubr.f32.vlgmr.msra.gmra.mrb[2].mxu1 %v443_v28 }
 0x166   : > { %1395 = vmatpush3.xpose.msra.mxu1 %v569_v22  ;;  %1396 = vmatprep.mubr.msk.f32.mxu1 %vm1652_vm0, %v1653_v1  ;;  %v1084_v22 = vsel %vm361_vm7, %v1083_v19, %v1082_v20 }
 0x167   : > { %1399 = vmatprep.subr.mxu1 %v1653_v1 }
 0x169   : > { %1397 = vmatmul.mubr.f32.vlgmr.msra.gmra.mrb[4].mxu1 %v546_v46 }
 0x16a   : > { %1400 = vmatpush3.xpose.msra.mxu1 %v672_v42  ;;  %1401 = vmatprep.mubr.msk.f32.mxu1 %vm1652_vm0, %v1653_v1 }
 0x16b   : > { %1404 = vmatprep.subr.mxu1 %v1653_v1 }
 0x16d   : > { %1402 = vmatmul.mubr.f32.vlgmr.msra.gmra.mrb[6].mxu1 %v649_v61 }
 0x16e   : > { %1405 = vmatpush3.xpose.msra.mxu1 %v775_v62  ;;  %1406 = vmatprep.mubr.msk.f32.mxu1 %vm1652_vm0, %v1653_v1 }
 0x16f   : > { %1409 = vmatprep.subr.mxu1 %v1653_v1 }
 0x171   : > { %1407 = vmatmul.mubr.f32.vlgmr.msra.gmra.mrb[8].mxu1 %v752_v9 }
 0x172   : > { %1410 = vmatpush3.xpose.msra.mxu1 %v878_v10  ;;  %1411 = vmatprep.mubr.msk.f32.mxu1 %vm1652_vm0, %v1653_v1 }
 0x173   : > { %1414 = vmatprep.subr.mxu1 %v1653_v1 }
 0x175   : > { %1412 = vmatmul.mubr.f32.vlgmr.msra.gmra.mrb[10].mxu1 %v855_v17 }
 0x176   : > { %1415 = vmatpush3.xpose.msra.mxu1 %v981_v18  ;;  %1416 = vmatprep.mubr.msk.f32.mxu1 %vm1652_vm0, %v1653_v1 }
 0x177   : > { %1419 = vmatprep.subr.mxu1 %v1653_v1 }
 0x179   : > { %1417 = vmatmul.mubr.f32.vlgmr.msra.gmra.mrb[12].mxu1 %v958_v21 }
 0x17a   : > { %1420 = vmatpush3.xpose.msra.mxu1 %v1084_v22  ;;  %1421 = vmatprep.mubr.msk.f32.mxu1 %vm1652_vm0, %v1653_v1 }
 0x17d   : > { %1422 = vmatmul.mubr.f32.vlgmr.msra.gmra.mrb[14].mxu1 %v1061_v23 }
 0x234   : > { %v430_v24 = vpop.f32.mrb[0].mxu1 }
 0x235   : > { %v1388_v25 = vpop.f32.mrb[1].mxu1 }
 0x238   : > { %v534_v26 = vpop.f32.mrb[2].mxu1 }
 0x239   : > { %v1157_v27 = vrot.slane %v534_v26, 7  ;;  %v1393_v28 = vpop.f32.mrb[3].mxu1 }
 0x23b   : > { %v1178_v29 = vsel %vm1177_vm8, %v430_v24, %v1157_v27 }
 0x23c   : > { %v637_v30 = vpop.f32.mrb[4].mxu1 }
 0x23d   : > { %v1160_v31 = vrot.slane %v637_v30, 6  ;;  %v1398_v32 = vpop.f32.mrb[5].mxu1 }
 0x23f   : > { %v1180_v33 = vsel %vm1179_vm9, %v1178_v29, %v1160_v31 }
 0x240   : > { %v740_v34 = vpop.f32.mrb[6].mxu1 }
 0x241   : > { %v1163_v35 = vrot.slane %v740_v34, 5  ;;  %v1403_v36 = vpop.f32.mrb[7].mxu1 }
 0x243   : > { %v1182_v1 = vsel %vm1181_vm10, %v1180_v33, %v1163_v35 }
 0x244   : > { %v843_v37 = vpop.f32.mrb[8].mxu1 }
 0x245   : > { %v1166_v11 = vrot.slane %v843_v37, 4  ;;  %v1408_v38 = vpop.f32.mrb[9].mxu1 }
 0x247   : > { %v1184_v39 = vsel %vm1183_vm11, %v1182_v1, %v1166_v11 }
 0x248   : > { %v946_v40 = vpop.f32.mrb[10].mxu1 }
 0x249   : > { %v1169_v41 = vrot.slane %v946_v40, 3  ;;  %v1413_v42 = vpop.f32.mrb[11].mxu1 }
 0x24b   : > { %v1186_v43 = vsel %vm1185_vm12, %v1184_v39, %v1169_v41 }
 0x24c   : > { %v1049_v44 = vpop.f32.mrb[12].mxu1 }
 0x24d   : > { %v1172_v45 = vrot.slane %v1049_v44, 2  ;;  %v1418_v46 = vpop.f32.mrb[13].mxu1 }
 0x24f   : > { %v1188_v47 = vsel %vm1187_vm13, %v1186_v43, %v1172_v45 }
 0x250   : > { %v1152_v48 = vpop.f32.mrb[14].mxu1 }
 0x251   : > { %v1175_v49 = vrot.slane %v1152_v48, 1  ;;  %v1423_v50 = vpop.f32.mrb[15].mxu1 }
 0x253   : > { %v1190_v51 = vsel %vm1189_vm14, %v1188_v47, %v1175_v49 }
 0x254   : > { %v1192_v52 = vsel %vm1191_vm15, %v1190_v51, -inf }
 0x255   : > { %1193 = vmax.xlane.f32.xlu0 %v1192_v52 }
 0x2e2   : > { %v1194_v53 = vpop.xlane.xlu0 %1193 }
 0x2e3   : > { %v1195_v54 = vsub.f32 %v1190_v51, %v1194_v53 }
 0x2e5   : > { %v1196_v55 = vmul.f32 1.442695, %v1195_v54 }
 0x2e7   : > { %1509 = vpow2.f32 %v1196_v55 }
 0x2f1   : > { %v1510_v56 = vpop.eup %1509 }
 0x2f2   : > { %v1198_v57 = vsel %vm1191_vm15, %v1510_v56, 0.0 }
 0x2f3   : > { %1199 = vadd.xlane.f32.xlu0 %v1198_v57 }
 0x380   : > { %v1200_v58 = vpop.xlane.xlu0 %1199 }
 0x381   : > { %1511 = vrcp.f32 %v1200_v58 }
 0x38b   : > { %v1512_v59 = vpop.eup %1511 }
 0x38c   : > { %v1202_v60 = vmul.f32 %v1512_v59, %v1510_v56 }
 0x38e   : > { %1203 = vst.msk [vmem:[%s238_s8] sm:$0xff] %vm1191_vm15, %v1202_v60 }
 0x38f PF: > { %p16_p9 = scmp.ge.s32.totalorder %s1718_s22, 4   ;;  %s2051_s12 = smov %s1635_s13 }
 0x390   : > { %s2052_s13 = smov %s1639_s14  ;;  %s2053_s14 = smov %s1747_s10 }
 0x391   : > { %s2054_s15 = smov %s1718_s22  ;;  %18 = sbr.rel (!%p16_p9) target bundleno = 5 (0x5), region = 89 }
 0x398   :  { %1223 = vsyncpa [#allocation3], 1 }
 0x399   :  { %1225 = vsyncpa [#allocation3 + $0x1], 1 }
 0x39a   :  { %1226 = vsyncpa [#allocation5], 1 }
 0x39b   :  { %1228 = vsyncpa [#allocation5 + $0x1], 1 }

</bundles_post_ra>
